<compile_context>
chip_gen: v6e
topology: v6e:2x2x1
jax: 0.10.0
libtpu: 0.0.40
codegen_flags: <defaults>
</compile_context>

<pallas_src>
import math
import functools

import jax
import jax.numpy as jnp
from jax.experimental import pallas as pl
from jax.experimental.pallas import tpu as pltpu


def cross_attention_kernel(x_ref, y_ref, wq_ref, wk_ref, wv_ref, wo_ref, bo_ref,
                           out_ref, attn_ref):
    Bt, N, D = x_ref.shape
    Di = wq_ref.shape[1]
    cdt = x_ref.dtype                      # compute dtype for MXU inputs

    # Fold the batch tile into the row axis for the projections: (Bt*N, D).
    x2 = x_ref[...].reshape(Bt * N, D)
    y2 = y_ref[...].reshape(Bt * N, D)

    wq = wq_ref[...]                       # (D, Di)  == to_q.weight.T
    wk = wk_ref[...]                       # (D, Di)
    wv = wv_ref[...]                       # (D, Di)
    wo = wo_ref[...]                       # (Di, D)  == to_out[0].weight.T
    bo = bo_ref[...]                       # (1, D)   float32

    # q/k/v projections (no bias), f32 accumulation on the MXU.
    q = jnp.dot(x2, wq, preferred_element_type=jnp.float32)   # (Bt*N, Di) f32
    k = jnp.dot(y2, wk, preferred_element_type=jnp.float32)
    v = jnp.dot(y2, wv, preferred_element_type=jnp.float32)

    # scale_dot: q / sqrt(E)
    q = q * (1.0 / math.sqrt(Di))

    q3 = q.reshape(Bt, N, Di).astype(cdt)
    k3 = k.reshape(Bt, N, Di).astype(cdt)
    v3 = v.reshape(Bt, N, Di).astype(cdt)

    # scores[b, n, m] = sum_d q[b, n, d] * k[b, m, d]
    # Batched dot_general contracting the last dims -> no explicit k.T.
    scores = jnp.einsum("bnd,bmd->bnm", q3, k3,
                        preferred_element_type=jnp.float32)   # (Bt, N, N) f32

    # Exact full-row softmax in f32 (exact divide so rows sum to 1).
    m = jnp.max(scores, axis=-1, keepdims=True)
    p = jnp.exp(scores - m)
    denom = jnp.sum(p, axis=-1, keepdims=True)
    attn = p / denom                                          # (Bt, N, N) f32

    # ctx[b, n, d] = sum_m attn[b, n, m] * v[b, m, d]
    ctx = jnp.einsum("bnm,bmd->bnd", attn.astype(cdt), v3,
                     preferred_element_type=jnp.float32)      # (Bt, N, Di) f32

    # Output projection: Linear(inner_dim -> in_dim) + bias; Dropout(p=0) = id.
    ctx2 = ctx.reshape(Bt * N, Di).astype(cdt)
    out = jnp.dot(ctx2, wo, preferred_element_type=jnp.float32) + bo  # (Bt*N, D)

    out_ref[...] = out.reshape(Bt, N, D).astype(out_ref.dtype)
    attn_ref[...] = attn.astype(attn_ref.dtype)


def _pick_batch_tile(B, N, D, Di):
    """Largest batch tile that (a) divides B, (b) keeps the per-step working
    set small, and (c) leaves >= 2 grid steps when possible (v7x: 2 TCs)."""
    # Rough f32 live bytes per batch element inside the kernel
    # (x, y, out tiles + q/k/v/ctx + scores + attn).
    per_b = 4 * (3 * N * D + 4 * N * Di + 2 * N * N)
    budget = 4 << 20                        # ~4 MiB of per-step working set
    bt = max(1, min(B, budget // max(per_b, 1)))
    if B >= 2:
        bt = min(bt, max(1, B // 2))        # keep >= 2 parallel grid steps
    while B % bt != 0:                      # grid must tile B evenly
        bt -= 1
    return bt


@functools.partial(jax.jit, static_argnames=("compute_dtype",))
def cross_attention(x, y, wq_t, wk_t, wv_t, wo_t, bo, *,
                    compute_dtype=jnp.bfloat16):
    """x, y: (B, N, D) float32. Weights pre-transposed to (in, out).

    Returns (out (B, N, D), attn (B, N, N)) float32 — same order/semantics as
    the PyTorch forward.  MXU inputs are cast to `compute_dtype` (bf16 by
    default) with float32 accumulation; softmax and outputs stay float32.
    """
    B, N, D = x.shape
    Di = wq_t.shape[1]
    cdt = jnp.dtype(compute_dtype)

    xc = x.astype(cdt)
    yc = y.astype(cdt)
    wqc = wq_t.astype(cdt)
    wkc = wk_t.astype(cdt)
    wvc = wv_t.astype(cdt)
    woc = wo_t.astype(cdt)
    bo2 = bo.reshape(1, D).astype(jnp.float32)

    Bt = _pick_batch_tile(B, N, D, Di)
    grid = (B // Bt,)

    # Explicit VMEM budget: resident weights + double-buffered in/out tiles
    # + headroom for the f32 in-kernel intermediates.
    weight_bytes = (3 * D * Di + Di * D) * cdt.itemsize + D * 4
    io_tile_bytes = Bt * N * (2 * D * cdt.itemsize + D * 4 + N * 4)
    vmem_limit = int(min(max(4 * io_tile_bytes + weight_bytes + (8 << 20),
                             16 << 20), 64 << 20))

    out, attn = pl.pallas_call(
        cross_attention_kernel,
        out_shape=(
            jax.ShapeDtypeStruct((B, N, D), jnp.float32),
            jax.ShapeDtypeStruct((B, N, N), jnp.float32),
        ),
        grid_spec=pltpu.PrefetchScalarGridSpec(
            num_scalar_prefetch=0,
            grid=grid,
            in_specs=[
                pl.BlockSpec((Bt, N, D), lambda b: (b, 0, 0)),  # x
                pl.BlockSpec((Bt, N, D), lambda b: (b, 0, 0)),  # y
                # Constant block index -> Pallas keeps the weight tiles
                # resident across grid steps (no per-step re-DMA).
                pl.BlockSpec((D, Di), lambda b: (0, 0)),        # Wq^T
                pl.BlockSpec((D, Di), lambda b: (0, 0)),        # Wk^T
                pl.BlockSpec((D, Di), lambda b: (0, 0)),        # Wv^T
                pl.BlockSpec((Di, D), lambda b: (0, 0)),        # Wo^T
                pl.BlockSpec((1, D), lambda b: (0, 0)),         # bias
            ],
            out_specs=[
                pl.BlockSpec((Bt, N, D), lambda b: (b, 0, 0)),  # out
                pl.BlockSpec((Bt, N, N), lambda b: (b, 0, 0)),  # attn
            ],
        ),
        compiler_params=pltpu.CompilerParams(
            dimension_semantics=("parallel",),
            vmem_limit_bytes=vmem_limit),
    )(xc, yc, wqc, wkc, wvc, woc, bo2)
    return out, attn


def reference_cross_attention(x, y, wq_t, wk_t, wv_t, wo_t, bo):
    """Pure-JAX float32 reference mirroring the PyTorch module."""
    q = x @ wq_t
    k = y @ wk_t
    v = y @ wv_t
    e = q.shape[-1]
    q = q / math.sqrt(e)
    scores = jnp.einsum("bnd,bmd->bnm", q, k)
    attn = jax.nn.softmax(scores, axis=-1)
    ctx = jnp.einsum("bnm,bmd->bnd", attn, v)
    out = ctx @ wo_t + bo
    return out, attn


if __name__ == "__main__":
    B, N, D = 8, 16, 32         # batch, sequence length, in_dim
    inner_dim = D               # inner_dim == 0 -> defaults to in_dim

    key = jax.random.PRNGKey(0)
    kx, ky, k1, k2, k3, k4, k5 = jax.random.split(key, 7)

    x = jax.random.normal(kx, (B, N, D), dtype=jnp.float32)
    y = jax.random.normal(ky, (B, N, D), dtype=jnp.float32)

    # nn.Linear weights are (out, in); we store them pre-transposed (in, out).
    bound = 1.0 / math.sqrt(D)
    wq_t = jax.random.uniform(k1, (D, inner_dim), jnp.float32, -bound, bound)
    wk_t = jax.random.uniform(k2, (D, inner_dim), jnp.float32, -bound, bound)
    wv_t = jax.random.uniform(k3, (D, inner_dim), jnp.float32, -bound, bound)
    bound_o = 1.0 / math.sqrt(inner_dim)
    wo_t = jax.random.uniform(k4, (inner_dim, D), jnp.float32, -bound_o, bound_o)
    bo = jax.random.uniform(k5, (D,), jnp.float32, -bound_o, bound_o)

    out_ref, attn_ref = reference_cross_attention(x, y, wq_t, wk_t, wv_t, wo_t, bo)

    # Fast path: bf16 MXU inputs, f32 accumulation / softmax / outputs.
    out_bf, attn_bf = cross_attention(x, y, wq_t, wk_t, wv_t, wo_t, bo,
                                      compute_dtype=jnp.bfloat16)
    jax.block_until_ready((out_bf, attn_bf))
    assert out_bf.shape == (B, N, D) and attn_bf.shape == (B, N, N)
    assert out_bf.dtype == jnp.float32 and attn_bf.dtype == jnp.float32
    assert jnp.allclose(out_bf, out_ref, atol=3e-2, rtol=3e-2)
    assert jnp.allclose(attn_bf, attn_ref, atol=3e-2, rtol=3e-2)
    assert jnp.allclose(jnp.sum(attn_bf, axis=-1), 1.0, atol=1e-3)

    # Exact-parity path: f32 compute dtype, tight tolerance vs. reference.
    out_f32, attn_f32 = cross_attention(x, y, wq_t, wk_t, wv_t, wo_t, bo,
                                        compute_dtype=jnp.float32)
    jax.block_until_ready((out_f32, attn_f32))
    assert jnp.allclose(out_f32, out_ref, atol=1e-5, rtol=1e-5)
    assert jnp.allclose(attn_f32, attn_ref, atol=1e-5, rtol=1e-5)
    assert jnp.allclose(jnp.sum(attn_f32, axis=-1), 1.0, atol=1e-5)

    print("KERNEL_OK")
</pallas_src>

<mosaic_0001>
module attributes {stable_mosaic.version = 11 : i64} {
  func.func @cross_attention_kernel(%arg0: i32, %arg1: memref<4x16x32xbf16, #tpu.memory_space<vmem>>, %arg2: memref<4x16x32xbf16, #tpu.memory_space<vmem>>, %arg3: memref<32x32xbf16, #tpu.memory_space<vmem>>, %arg4: memref<32x32xbf16, #tpu.memory_space<vmem>>, %arg5: memref<32x32xbf16, #tpu.memory_space<vmem>>, %arg6: memref<32x32xbf16, #tpu.memory_space<vmem>>, %arg7: memref<1x32xf32, #tpu.memory_space<vmem>>, %arg8: memref<4x16x32xf32, #tpu.memory_space<vmem>>, %arg9: memref<4x16x16xf32, #tpu.memory_space<vmem>>) attributes {dimension_semantics = [#tpu.dimension_semantics<parallel>], iteration_bounds = array<i64: 2>, scalar_prefetch = 0 : i64, scratch_operands = 0 : i64, tpu.core_type = #tpu.core_type<tc>, window_params = [{transform_indices = @transform_0, window_bounds = array<i64: 4, 16, 32>}, {transform_indices = @transform_1, window_bounds = array<i64: 4, 16, 32>}, {pipeline_mode = #tpu.pipeline_mode<synchronous>, transform_indices = @transform_2, window_bounds = array<i64: 32, 32>}, {pipeline_mode = #tpu.pipeline_mode<synchronous>, transform_indices = @transform_3, window_bounds = array<i64: 32, 32>}, {pipeline_mode = #tpu.pipeline_mode<synchronous>, transform_indices = @transform_4, window_bounds = array<i64: 32, 32>}, {pipeline_mode = #tpu.pipeline_mode<synchronous>, transform_indices = @transform_5, window_bounds = array<i64: 32, 32>}, {pipeline_mode = #tpu.pipeline_mode<synchronous>, transform_indices = @transform_6, window_bounds = array<i64: 1, 32>}, {transform_indices = @transform_7, window_bounds = array<i64: 4, 16, 32>}, {transform_indices = @transform_8, window_bounds = array<i64: 4, 16, 16>}]} {
    %c0 = arith.constant 0 : index
    %c0_0 = arith.constant 0 : index
    %c0_1 = arith.constant 0 : index
    %0 = vector.load %arg1[%c0, %c0_0, %c0_1] : memref<4x16x32xbf16, #tpu.memory_space<vmem>>, vector<4x16x32xbf16>
    %1 = vector.shape_cast %0 : vector<4x16x32xbf16> to vector<64x32xbf16>
    %c0_2 = arith.constant 0 : index
    %c0_3 = arith.constant 0 : index
    %c0_4 = arith.constant 0 : index
    %2 = vector.load %arg2[%c0_2, %c0_3, %c0_4] : memref<4x16x32xbf16, #tpu.memory_space<vmem>>, vector<4x16x32xbf16>
    %3 = vector.shape_cast %2 : vector<4x16x32xbf16> to vector<64x32xbf16>
    %c0_5 = arith.constant 0 : index
    %c0_6 = arith.constant 0 : index
    %4 = vector.load %arg3[%c0_5, %c0_6] : memref<32x32xbf16, #tpu.memory_space<vmem>>, vector<32x32xbf16>
    %c0_7 = arith.constant 0 : index
    %c0_8 = arith.constant 0 : index
    %5 = vector.load %arg4[%c0_7, %c0_8] : memref<32x32xbf16, #tpu.memory_space<vmem>>, vector<32x32xbf16>
    %c0_9 = arith.constant 0 : index
    %c0_10 = arith.constant 0 : index
    %6 = vector.load %arg5[%c0_9, %c0_10] : memref<32x32xbf16, #tpu.memory_space<vmem>>, vector<32x32xbf16>
    %c0_11 = arith.constant 0 : index
    %c0_12 = arith.constant 0 : index
    %7 = vector.load %arg6[%c0_11, %c0_12] : memref<32x32xbf16, #tpu.memory_space<vmem>>, vector<32x32xbf16>
    %c0_13 = arith.constant 0 : index
    %c0_14 = arith.constant 0 : index
    %8 = vector.load %arg7[%c0_13, %c0_14] : memref<1x32xf32, #tpu.memory_space<vmem>>, vector<1x32xf32>
    %cst = arith.constant dense<0.000000e+00> : vector<64x32xf32>
    %9 = tpu.matmul %1, %4, %cst {dimension_numbers = #tpu.dot_dimension_numbers<[1], [0], [0], [1], [0, 0, 1, 1], [], []>} : vector<64x32xbf16>, vector<32x32xbf16>, vector<64x32xf32> -> vector<64x32xf32>
    %cst_15 = arith.constant dense<0.000000e+00> : vector<64x32xf32>
    %10 = tpu.matmul %3, %5, %cst_15 {dimension_numbers = #tpu.dot_dimension_numbers<[1], [0], [0], [1], [0, 0, 1, 1], [], []>} : vector<64x32xbf16>, vector<32x32xbf16>, vector<64x32xf32> -> vector<64x32xf32>
    %cst_16 = arith.constant dense<0.000000e+00> : vector<64x32xf32>
    %11 = tpu.matmul %3, %6, %cst_16 {dimension_numbers = #tpu.dot_dimension_numbers<[1], [0], [0], [1], [0, 0, 1, 1], [], []>} : vector<64x32xbf16>, vector<32x32xbf16>, vector<64x32xf32> -> vector<64x32xf32>
    %cst_17 = arith.constant 0.176776692 : f32
    %12 = vector.broadcast %cst_17 : f32 to vector<64x32xf32>
    %13 = arith.mulf %9, %12 : vector<64x32xf32>
    %14 = vector.shape_cast %13 : vector<64x32xf32> to vector<4x16x32xf32>
    %15 = arith.truncf %14 : vector<4x16x32xf32> to vector<4x16x32xbf16>
    %16 = vector.shape_cast %10 : vector<64x32xf32> to vector<4x16x32xf32>
    %17 = arith.truncf %16 : vector<4x16x32xf32> to vector<4x16x32xbf16>
    %18 = vector.shape_cast %11 : vector<64x32xf32> to vector<4x16x32xf32>
    %19 = arith.truncf %18 : vector<4x16x32xf32> to vector<4x16x32xbf16>
    "tpu.trace_start"() <{level = 10 : i32, message = "bnd,bmd->bnm"}> : () -> ()
    %cst_18 = arith.constant dense<0.000000e+00> : vector<4x16x16xf32>
    %20 = tpu.matmul %15, %17, %cst_18 {dimension_numbers = #tpu.dot_dimension_numbers<[2], [2], [1], [1], [0, 0, 0, 1, 1, 1], [0], [0]>} : vector<4x16x32xbf16>, vector<4x16x32xbf16>, vector<4x16x16xf32> -> vector<4x16x16xf32>
    "tpu.trace_stop"() : () -> ()
    %cst_19 = arith.constant dense<0xFF800000> : vector<4x16xf32>
    %21 = vector.multi_reduction <maximumf>, %20, %cst_19 [2] : vector<4x16x16xf32> to vector<4x16xf32>
    %22 = vector.shape_cast %21 : vector<4x16xf32> to vector<4x16x1xf32>
    %23 = vector.broadcast %22 : vector<4x16x1xf32> to vector<4x16x16xf32>
    %24 = arith.subf %20, %23 : vector<4x16x16xf32>
    %25 = math.exp %24 : vector<4x16x16xf32>
    %cst_20 = arith.constant dense<0.000000e+00> : vector<4x16xf32>
    %26 = vector.multi_reduction <add>, %25, %cst_20 [2] : vector<4x16x16xf32> to vector<4x16xf32>
    %27 = vector.shape_cast %26 : vector<4x16xf32> to vector<4x16x1xf32>
    %28 = vector.broadcast %27 : vector<4x16x1xf32> to vector<4x16x16xf32>
    %29 = arith.divf %25, %28 : vector<4x16x16xf32>
    %30 = arith.truncf %29 : vector<4x16x16xf32> to vector<4x16x16xbf16>
    "tpu.trace_start"() <{level = 10 : i32, message = "bnm,bmd->bnd"}> : () -> ()
    %cst_21 = arith.constant dense<0.000000e+00> : vector<4x16x32xf32>
    %31 = tpu.matmul %30, %19, %cst_21 {dimension_numbers = #tpu.dot_dimension_numbers<[2], [1], [1], [2], [0, 0, 0, 1, 1, 2], [0], [0]>} : vector<4x16x16xbf16>, vector<4x16x32xbf16>, vector<4x16x32xf32> -> vector<4x16x32xf32>
    "tpu.trace_stop"() : () -> ()
    %32 = vector.shape_cast %31 : vector<4x16x32xf32> to vector<64x32xf32>
    %33 = arith.truncf %32 : vector<64x32xf32> to vector<64x32xbf16>
    %cst_22 = arith.constant dense<0.000000e+00> : vector<64x32xf32>
    %34 = tpu.matmul %33, %7, %cst_22 {dimension_numbers = #tpu.dot_dimension_numbers<[1], [0], [0], [1], [0, 0, 1, 1], [], []>} : vector<64x32xbf16>, vector<32x32xbf16>, vector<64x32xf32> -> vector<64x32xf32>
    %35 = vector.broadcast %8 : vector<1x32xf32> to vector<64x32xf32>
    %36 = arith.addf %34, %35 : vector<64x32xf32>
    %37 = vector.shape_cast %36 : vector<64x32xf32> to vector<4x16x32xf32>
    %c0_23 = arith.constant 0 : index
    %c0_24 = arith.constant 0 : index
    %c0_25 = arith.constant 0 : index
    %38 = vector.load %arg8[%c0_23, %c0_24, %c0_25] : memref<4x16x32xf32, #tpu.memory_space<vmem>>, vector<4x16x32xf32>
    tpu.vector_store %arg8[%c0_23, %c0_24, %c0_25], %37 {strides = array<i32>} : memref<4x16x32xf32, #tpu.memory_space<vmem>>, vector<4x16x32xf32>,
    %c0_26 = arith.constant 0 : index
    %c0_27 = arith.constant 0 : index
    %c0_28 = arith.constant 0 : index
    %39 = vector.load %arg9[%c0_26, %c0_27, %c0_28] : memref<4x16x16xf32, #tpu.memory_space<vmem>>, vector<4x16x16xf32>
    tpu.vector_store %arg9[%c0_26, %c0_27, %c0_28], %29 {strides = array<i32>} : memref<4x16x16xf32, #tpu.memory_space<vmem>>, vector<4x16x16xf32>,
    return
  }
  func.func @transform_0(%arg0: i32) -> (i32, i32, i32) {
    %c0_i32 = arith.constant 0 : i32
    %c0_i32_0 = arith.constant 0 : i32
    %c0_i32_1 = arith.constant 0 : i32
    return %arg0, %c0_i32, %c0_i32_0 : i32, i32, i32
  }
  func.func @transform_1(%arg0: i32) -> (i32, i32, i32) {
    %c0_i32 = arith.constant 0 : i32
    %c0_i32_0 = arith.constant 0 : i32
    %c0_i32_1 = arith.constant 0 : i32
    return %arg0, %c0_i32, %c0_i32_0 : i32, i32, i32
  }
  func.func @transform_2(%arg0: i32) -> (i32, i32) {
    %c0_i32 = arith.constant 0 : i32
    %c0_i32_0 = arith.constant 0 : i32
    %c0_i32_1 = arith.constant 0 : i32
    return %c0_i32, %c0_i32_0 : i32, i32
  }
  func.func @transform_3(%arg0: i32) -> (i32, i32) {
    %c0_i32 = arith.constant 0 : i32
    %c0_i32_0 = arith.constant 0 : i32
    %c0_i32_1 = arith.constant 0 : i32
    return %c0_i32, %c0_i32_0 : i32, i32
  }
  func.func @transform_4(%arg0: i32) -> (i32, i32) {
    %c0_i32 = arith.constant 0 : i32
    %c0_i32_0 = arith.constant 0 : i32
    %c0_i32_1 = arith.constant 0 : i32
    return %c0_i32, %c0_i32_0 : i32, i32
  }
  func.func @transform_5(%arg0: i32) -> (i32, i32) {
    %c0_i32 = arith.constant 0 : i32
    %c0_i32_0 = arith.constant 0 : i32
    %c0_i32_1 = arith.constant 0 : i32
    return %c0_i32, %c0_i32_0 : i32, i32
  }
  func.func @transform_6(%arg0: i32) -> (i32, i32) {
    %c0_i32 = arith.constant 0 : i32
    %c0_i32_0 = arith.constant 0 : i32
    %c0_i32_1 = arith.constant 0 : i32
    return %c0_i32, %c0_i32_0 : i32, i32
  }
  func.func @transform_7(%arg0: i32) -> (i32, i32, i32) {
    %c0_i32 = arith.constant 0 : i32
    %c0_i32_0 = arith.constant 0 : i32
    %c0_i32_1 = arith.constant 0 : i32
    return %arg0, %c0_i32, %c0_i32_0 : i32, i32, i32
  }
  func.func @transform_8(%arg0: i32) -> (i32, i32, i32) {
    %c0_i32 = arith.constant 0 : i32
    %c0_i32_0 = arith.constant 0 : i32
    %c0_i32_1 = arith.constant 0 : i32
    return %arg0, %c0_i32, %c0_i32_0 : i32, i32, i32
  }
}

</mosaic_0001>

<bundles_post_ra>
// kernel: cross_attention.1
= control target key start
LH: loop header
LB: loop body
LE: loop exit
PB: predicated region body
PF: predicated region fallthrough
CT: control target
= control target key end

     0   :  { %14 = vsyncpa [#allocation3], 0  ;;  %s2146_s0 = inlined_call_operand.vmem [shape: bf16[8,16,32], index: 0, kind: input, shape index: {}]   ;;  %s2147_s1 = inlined_call_operand.vmem [shape: bf16[8,16,32], index: 1, kind: input, shape index: {}]   ;;  %s2148_s2 = inlined_call_operand.vmem [shape: bf16[32,32], index: 2, kind: input, shape index: {}]   ;;  %s2149_s3 = inlined_call_operand.vmem [shape: bf16[32,32], index: 3, kind: input, shape index: {}]   ;;  %s2150_s4 = inlined_call_operand.vmem [shape: bf16[32,32], index: 4, kind: input, shape index: {}]   ;;  %s2151_s5 = inlined_call_operand.vmem [shape: bf16[32,32], index: 5, kind: input, shape index: {}]   ;;  %s2152_s6 = inlined_call_operand.vmem [shape: f32[1,32], index: 6, kind: input, shape index: {}]   ;;  %s2153_s7 = inlined_call_operand.hbm [shape: f32[8,16,32], index: 7, kind: output, shape index: {0}]   ;;  %s2154_s8 = inlined_call_operand.hbm [shape: f32[8,16,16], index: 8, kind: output, shape index: {1}]  }
   0x1   :  { %16 = vsyncpa [#allocation3 + $0x1], 0 }
   0x2   :  { %17 = vsyncpa [#allocation5], 0 }
   0x3   :  { %19 = vsyncpa [#allocation5 + $0x1], 0  ;;  %s1860_s27 = smov 0   ;;  %s1862_s28 = smov 0  }
   0x4   :  { %s1864_s29 = smov 0   ;;  %s1866_s30 = smov 0  }
   0x5 LB: > { %s1881_s9 = sadd.s32 4294967295, %s1807_s30   ;;  %s1412_s10 = sadd.s32 4294967294, %s1807_s30   ;;  %s1807_s30 = sphi %s1866_s30, %s2164_s30   ;;  %s1803_s29 = sphi %s1864_s29, %s2163_s29   ;;  %s1799_s28 = sphi %s1862_s28, %s2162_s28   ;;  %s1795_s27 = sphi %s1860_s27, %s2161_s27  }
   0x6   : > { %s1885_s11 = sadd.s32 1, %s1807_s30   ;;  %s189_s12 = sadd.s32 1, %s1803_s29 }
   0x7   : > { %s186_s13 = ssub.s32 %s1807_s30, %s1885_s11  ;;  %p199_p0 = scmp.ne.s32.totalorder %s1803_s29, %s1799_s28 }
   0x8   : > { %p187_p1 = scmp.eq.s32.totalorder %s186_s13, 0  ;;  %p200_p2 = scmp.eq.s32.totalorder %s1881_s9, 1 }
   0x9   : > { %p205_p3 = scmp.ne.s32.totalorder %s1799_s28, %s1795_s27  ;;  %p206_p4 = scmp.eq.s32.totalorder %s1412_s10, 1 }
   0xa   : > { %s1896_s14 = scalar_select %p187_p1, %s1803_s29, %s189_s12  }
   0xb   : > { %p1898_p5 = por %p200_p2, %p199_p0  ;;  %p1902_p6 = por %p206_p4, %p205_p3 }
   0xc   : > { %p1415_p7 = scmp.ge.s32.totalorder %s1807_s30, 1  ;;  %p285_p8 = scmp.lt.s32.totalorder %s1807_s30, 3 }
   0xe   : > { %p286_p9 = pnand %p1415_p7, %p285_p8 }
   0xf   : > { %s1418_s19 = sshll.u32 (!%p286_p9), %s1881_s9, 2  ;;  %s2155_s18 = sshll.u32 (!%p286_p9), %s1881_s9, 10 }
  0x10   : > { %289 = sbr.rel (%p286_p9) target bundleno = 1188 (0x4a4), region = 48  ;;  %p332_p10 = scmp.lt.s32.totalorder (!%p286_p9), %s1418_s19, 7 }
  0x11   : > { %s2052_s21 = scalar_lea.hbm (!%p286_p9), %s2154_s8, %s2155_s18  ;;  %s1811_s12 = smov (!%p286_p9), [#allocation4]  }
  0x12   : > { %s1721_s13 = sshll.u32 (!%p286_p9), %s1811_s12, 4  ;;  %s1722_s13 = int_to_ptr.vmem [resolvable:$false] %s1721_s13 }
  0x15   : > { %v1669_v0 = vld [vmem:[%s2148_s2 + $0x8] sm:$0xff]   ;;  %v1670_v1 = vld [vmem:[%s2148_s2] sm:$0xff]   ;;  %s2166_s19 = smov (!%p332_p10, %s1418_s19), 7  ;;  %vm413_vm0 = vcmask 261120   ;;  %v1809_v14 = vmov 0.0   ;;  %vm1810_vm1 = vmmov 0  }
  0x16   : > { %1617 = vmatprep.subr.bf16.mxu1 %v1669_v0  ;;  %1521 = vmatprep.subr.bf16.mxu0 %v1669_v0  ;;  %v1673_v2 = vld [vmem:[%s2149_s3 + $0x8] sm:$0xff]   ;;  %s1475_s24 = sshll.u32 %s2166_s19, 3  ;;  %v1674_v3 = vld [vmem:[%s2149_s3] sm:$0xff]   ;;  %vm885_vm2 = vcmask 130048  }
  0x17   : > { %1619 = vmatpush3.bf16.msra.mxu1 %v1669_v0  ;;  %1522 = vmatpush3.bf16.msra.mxu0 %v1669_v0  ;;  %s336_s10 = scalar_lea.vmem %s2146_s0, %s1475_s24  ;;  %s343_s17 = scalar_lea.vmem %s2147_s1, %s1475_s24  ;;  %v1681_v12 = vld [vmem:[%s2150_s4 + $0x8] sm:$0xff]   ;;  %v1682_v13 = vld [vmem:[%s2150_s4] sm:$0xff]  }
  0x18   : > { %1618 = vmatprep.subr.bf16.mxu1 %v1670_v1  ;;  %1523 = vmatprep.subr.bf16.mxu0 %v1670_v1  ;;  %v1671_v4 = vld [vmem:[%s336_s10 + $0x10] sm:$0xff]   ;;  %v1672_v5 = vld [vmem:[%s336_s10 + $0x18] sm:$0xff]   ;;  %v1675_v6 = vld [vmem:[%s343_s17] sm:$0xff]   ;;  %s2000_s24 = sand.u32 1, %s1799_s28  }
  0x19   : > { %1529 = vmatprep.mubr.msk.bf16.mxu1 %vm413_vm0, %v1671_v4  ;;  %v1677_v7 = vld [vmem:[%s336_s10] sm:$0xff]   ;;  %v1678_v8 = vld [vmem:[%s336_s10 + $0x8] sm:$0xff]   ;;  %v1679_v10 = vld [vmem:[%s343_s17 + $0x10] sm:$0xff]   ;;  %s2156_s25 = sshll.u32 %s2000_s24, 6  ;;  %s1275_s23 = scalar_lea.sflag [#allocation5], %s2000_s24 }
  0x1a   : > { %1525 = vmatprep.mubr.msk.bf16.mxu0 %vm413_vm0, %v1677_v7  ;;  %v1676_v9 = vld [vmem:[%s343_s17 + $0x8] sm:$0xff]   ;;  %v1680_v11 = vld [vmem:[%s343_s17 + $0x18] sm:$0xff]   ;;  %s2005_s26 = scalar_lea.vmem [#allocation4], %s2156_s25  ;;  %s1723_s17 = scalar_lea.vmem %s1722_s13, 2048 }
  0x1b   : > { %1620 = vmatpush3.bf16.msra.mxu1 %v1670_v1  ;;  %1524 = vmatpush3.bf16.msra.mxu0 %v1670_v1  ;;  %s1306_s22 = sshll.u32 %s2005_s26, 4  ;;  %s2055_s22 = int_to_ptr.vmem [resolvable:$true] %s1306_s22 }
  0x1c   : > { %1533 = vmatprep.subr.bf16.mxu1 %v1673_v2  ;;  %1545 = vmatprep.subr.bf16.mxu0 %v1681_v12  ;;  %s1717_s10 = scalar_lea.vmem %s2055_s22, 1024  ;;  %p1724_p0 = scmp.lt.s32.totalorder %s2055_s22, %s1722_s13 }
  0x1d   : > { %p1718_p11 = scmp.ne.s32.totalorder %s2055_s22, %s1717_s10  ;;  %p1725_p1 = scmp.lt.s32.totalorder %s1723_s17, %s1717_s10 }
  0x1e   : > { %1530 = vmatmul.mubr.msk.bf16.vlgmr.msra.gmra.mxu1 %vm413_vm0, %v1672_v5  ;;  %1526 = vmatmul.mubr.msk.bf16.vlgmr.msra.gmra.mxu0 %vm413_vm0, %v1678_v8 }
  0x1f   : > { %1534 = vmatpush3.bf16.msra.mxu1 %v1673_v2  ;;  %1537 = vmatprep.mubr.msk.bf16.mxu1 %vm413_vm0, %v1675_v6  ;;  %p1719_p12 = pnand %p1718_p11, %p1898_p5  ;;  %p1726_p2 = por %p1725_p1, %p1724_p0 }
  0x20   : > { %1535 = vmatprep.subr.bf16.mxu1 %v1674_v3  ;;  %1549 = vmatprep.mubr.msk.bf16.mxu0 %vm413_vm0, %v1675_v6 }
  0x21   : > { %1546 = vmatpush3.bf16.msra.mxu0 %v1681_v12  ;;  %p1720_p13 = pneg %p1719_p12 }
  0x22   : > { %1547 = vmatprep.subr.bf16.mxu0 %v1682_v13 }
  0x23   : > { %1536 = vmatpush3.bf16.msra.mxu1 %v1674_v3  ;;  %p1727_p3 = pnand %p1726_p2, %p1720_p13 }
  0x24   : > { %1557 = vmatprep.subr.bf16.mxu1 %v1809_v14 }
  0x25   : > { %1548 = vmatpush3.bf16.msra.mxu0 %v1682_v13 }
  0x26   : > { %1538 = vmatmul.mubr.msk.bf16.vlgmr.msra.gmra.mxu1 %vm413_vm0, %v1676_v9  ;;  %1569 = vmatprep.subr.bf16.mxu0 %v1809_v14 }
  0x27   : > { %1541 = vmatprep.mubr.msk.bf16.mxu1 %vm413_vm0, %v1679_v10 }
  0x28   : > { %1550 = vmatmul.mubr.msk.bf16.vlgmr.msra.gmra.mxu0 %vm413_vm0, %v1676_v9 }
  0x29   : > { %1553 = vmatprep.mubr.msk.bf16.mxu0 %vm413_vm0, %v1679_v10 }
  0x2e   : > { %1542 = vmatmul.mubr.msk.bf16.gmra.mxu1 %vm413_vm0, %v1680_v11 }
  0x2f   : > { %1559 = vmatprep.mubr.msk.bf16.mxu1 %vm1810_vm1, %v1809_v14 }
  0x30   : > { %1554 = vmatmul.mubr.msk.bf16.gmra.mxu0 %vm413_vm0, %v1680_v11 }
  0x31   : > { %1571 = vmatprep.mubr.msk.bf16.mxu0 %vm1810_vm1, %v1809_v14 }
  0xde   : > { %v1531_v15 = vpop.f32.mrf.mxu1  ;;  %v1527_v18 = vpop.f32.mrf.mxu0 }
  0xdf   : > { %v679_v41 = vmul.f32 0.17677669, %v1527_v18  ;;  %v683_v49 = vmul.f32 0.17677669, %v1531_v15 }
  0xe0   : > { %v476_v16 = vpop.f32.mrf.mxu1  ;;  %v460_v21 = vpop.f32.mrf.mxu0 }
  0xe1   : > { %v677_v31 = vmul.f32 0.17677669, %v460_v21  ;;  %v681_v43 = vmul.f32 0.17677669, %v476_v16 }
  0xe2   : > { %v1532_v17 = vpop.f32.mrf.mxu1  ;;  %v1528_v24 = vpop.f32.mrf.mxu0 }
  0xe3   : > { %v680_v42 = vmul.f32 0.17677669, %v1528_v24  ;;  %v684_v48 = vmul.f32 0.17677669, %v1532_v17 }
  0xe4   : > { %v479_v19 = vpop.f32.mrf.mxu1  ;;  %v463_v28 = vpop.f32.mrf.mxu0 }
  0xe5   : > { %v678_v32 = vmul.f32 0.17677669, %v463_v28  ;;  %v682_v40 = vmul.f32 0.17677669, %v479_v19  ;;  %v686_v46 = vpack.c.bf16 %v680_v42, %v679_v41  ;;  %v688_v50 = vpack.c.bf16 %v684_v48, %v683_v49 }
  0xe6   : > { %v1539_v20 = vpop.f32.mrf.mxu1 }
  0xe7   : > { %v685_v36 = vpack.c.bf16 %v678_v32, %v677_v31  ;;  %v687_v45 = vpack.c.bf16 %v682_v40, %v681_v43 }
  0xe8   : > { %v569_v22 = vpop.f32.mrf.mxu1  ;;  %v1551_v51 = vpop.f32.mrf.mxu0 }
  0xea   : > { %v1540_v23 = vpop.f32.mrf.mxu1  ;;  %v646_v52 = vpop.f32.mrf.mxu0 }
  0xeb   : > { %v690_v34 = vpack.c.bf16 %v1540_v23, %v1539_v20 }
  0xec   : > { %v572_v25 = vpop.f32.mrf.mxu1  ;;  %v1552_v53 = vpop.f32.mrf.mxu0 }
  0xed   : > { %v689_v26 = vpack.c.bf16 %v572_v25, %v569_v22  ;;  %v748_v38 = vsel %vm413_vm0, %v690_v34, 0  ;;  %v694_v54 = vpack.c.bf16 %v1552_v53, %v1551_v51 }
  0xee   : > { %v1543_v27 = vpop.f32.mrf.mxu1  ;;  %v649_v55 = vpop.f32.mrf.mxu0 }
  0xef   : > { %v701_v29 = vsel %vm413_vm0, %v689_v26, 0  ;;  %v693_v56 = vpack.c.bf16 %v649_v55, %v646_v52 }
  0xf0   : > { %v585_v30 = vpop.f32.mrf.mxu1  ;;  %1558 = vmatpush3.bf16.xpose.msra.mxu1 %v701_v29  ;;  %v1971_v57 = vpop.f32.mrf.mxu0 }
  0xf1   : > { %1563 = vmatprep.subr.bf16.mxu1 %v1809_v14 }
  0xf2   : > { %v1544_v33 = vpop.f32.mrf.mxu1  ;;  %v1974_v58 = vpop.f32.mrf.mxu0 }
  0xf3   : > { %v692_v44 = vpack.c.bf16 %v1544_v33, %v1543_v27 }
  0xf4   : > { %v588_v35 = vpop.f32.mrf.mxu1  ;;  %v1977_v59 = vpop.f32.mrf.mxu0 }
  0xf5   : > { %v691_v37 = vpack.c.bf16 %v588_v35, %v585_v30  ;;  %v842_v47 = vsel %vm413_vm0, %v692_v44, 0  ;;  %v696_v60 = vpack.c.bf16 %v1977_v59, %v1971_v57  ;;  %v1683_v57 = vld [vmem:[%s2151_s5 + $0x8] sm:$0xff]  }
  0xf6   : > { %v1983_v2 = vpop.f32.mrf.mxu0 }
  0xf7   : > { %v795_v39 = vsel %vm413_vm0, %v691_v37, 0  ;;  %1560 = vmatmul.mubr.msk.bf16.vlgmr.msra.gmra.mxu1 %vm413_vm0, %v685_v36 }
  0xf8   : > { %1564 = vmatpush3.bf16.xpose.msra.mxu1 %v748_v38  ;;  %1570 = vmatpush3.bf16.xpose.msra.mxu0 %v795_v39 }
  0xf9   : > { %1565 = vmatprep.mubr.msk.bf16.mxu1 %vm1810_vm1, %v1809_v14  ;;  %1575 = vmatprep.subr.bf16.mxu1 %v1809_v14 }
  0xfa   : > { %1581 = vmatprep.subr.bf16.mxu0 %v1809_v14 }
  0xff   : > { %1566 = vmatmul.mubr.msk.bf16.vlgmr.msra.gmra.mxu1 %vm413_vm0, %v686_v46  ;;  %1572 = vmatmul.mubr.msk.bf16.vlgmr.msra.gmra.mxu0 %vm413_vm0, %v687_v45 }
 0x100   : > { %1576 = vmatpush3.bf16.xpose.msra.mxu1 %v842_v47  ;;  %1577 = vmatprep.mubr.msk.bf16.mxu1 %vm1810_vm1, %v1809_v14 }
 0x101   : > { %1587 = vmatprep.subr.bf16.mxu1 %v1809_v14  ;;  %1583 = vmatprep.mubr.msk.bf16.mxu0 %vm1810_vm1, %v1809_v14 }
 0x102   : > { %1582 = vmatpush3.bf16.msra.mxu0 %v693_v56 }
 0x103   : > { %1593 = vmatprep.subr.bf16.mxu0 %v1809_v14 }
 0x107   : > { %1578 = vmatmul.mubr.msk.bf16.vlgmr.msra.gmra.mxu1 %vm413_vm0, %v688_v50 }
 0x108   : > { %1589 = vmatprep.mubr.msk.bf16.mxu1 %vm1810_vm1, %v1809_v14  ;;  %1588 = vmatpush3.bf16.msra.mxu1 %v694_v54 }
 0x109   : > { %1599 = vmatprep.subr.bf16.mxu1 %v1809_v14 }
 0x1b7   : > { %v737_v61 = vpop.f32.mrf.mxu1 }
 0x1b8   : > { %v886_v62 = vsel %vm885_vm2, %v737_v61, -inf }
 0x1b9   : > { %887 = vmax.xlane.f32.xlu0 %v886_v62  ;;  %v1561_v63 = vpop.f32.mrf.mxu1 }
 0x1bb   : > { %v740_v0 = vpop.f32.mrf.mxu1 }
 0x1bc   : > { %v889_v1 = vsel %vm885_vm2, %v740_v0, -inf }
 0x1bd   : > { %890 = vmax.xlane.f32.xlu0 %v889_v1  ;;  %v1562_v3 = vpop.f32.mrf.mxu1 }
 0x1bf   : > { %v784_v4 = vpop.f32.mrf.mxu1  ;;  %v831_v5 = vpop.f32.mrf.mxu0 }
 0x1c0   : > { %v892_v6 = vsel %vm885_vm2, %v784_v4, -inf  ;;  %v898_v7 = vsel %vm885_vm2, %v831_v5, -inf }
 0x1c1   : > { %893 = vmax.xlane.f32.xlu1 %v892_v6  ;;  %v1567_v8 = vpop.f32.mrf.mxu1  ;;  %899 = vmax.xlane.f32.xlu0 %v898_v7  ;;  %v1573_v9 = vpop.f32.mrf.mxu0 }
 0x1c3   : > { %v787_v10 = vpop.f32.mrf.mxu1  ;;  %v834_v11 = vpop.f32.mrf.mxu0 }
 0x1c4   : > { %v895_v12 = vsel %vm885_vm2, %v787_v10, -inf  ;;  %v901_v18 = vsel %vm885_vm2, %v834_v11, -inf }
 0x1c5   : > { %896 = vmax.xlane.f32.xlu1 %v895_v12  ;;  %v1568_v13 = vpop.f32.mrf.mxu1  ;;  %v1574_v15 = vpop.f32.mrf.mxu0 }
 0x1c7   : > { %v878_v16 = vpop.f32.mrf.mxu1 }
 0x1c8   : > { %v904_v17 = vsel %vm885_vm2, %v878_v16, -inf }
 0x1c9   : > { %v1579_v19 = vpop.f32.mrf.mxu1  ;;  %905 = vmax.xlane.f32.xlu0 %v904_v17  ;;  %902 = vmax.xlane.f32.xlu1 %v901_v18 }
 0x1ca   : > { %v695_v19 = vpack.c.bf16 %v1983_v2, %v1974_v58 }
 0x1cb   : > { %v881_v20 = vpop.f32.mrf.mxu1 }
 0x1cc   : > { %v907_v21 = vsel %vm885_vm2, %v881_v20, -inf }
 0x1cd   : > { %v1580_v22 = vpop.f32.mrf.mxu1  ;;  %908 = vmax.xlane.f32.xlu1 %v907_v21 }
 0x242   : > { %v888_v23 = vpop.xlane.xlu0 %887 }
 0x243   : > { %v910_v24 = vsub.f32 %v737_v61, %v888_v23 }
 0x245   : > { %v918_v25 = vmul.f32 1.442695, %v910_v24 }
 0x246   : > { %v891_v26 = vpop.xlane.xlu0 %890 }
 0x247   : > { %1685 = vpow2.f32 %v918_v25  ;;  %v911_v27 = vsub.f32 %v740_v0, %v891_v26 }
 0x249   : > { %v920_v28 = vmul.f32 1.442695, %v911_v27 }
 0x24a   : > { %v894_v29 = vpop.xlane.xlu1 %893  ;;  %v900_v30 = vpop.xlane.xlu0 %899 }
 0x24b   : > { %1687 = vpow2.f32 %v920_v28  ;;  %v912_v31 = vsub.f32 %v784_v4, %v894_v29  ;;  %v914_v32 = vsub.f32 %v831_v5, %v900_v30 }
 0x24d   : > { %v922_v33 = vmul.f32 1.442695, %v912_v31  ;;  %v926_v34 = vmul.f32 1.442695, %v914_v32 }
 0x24e   : > { %v897_v35 = vpop.xlane.xlu1 %896 }
 0x24f   : > { %1689 = vpow2.f32 %v922_v33  ;;  %v913_v36 = vsub.f32 %v787_v10, %v897_v35 }
 0x250   : > { %1691 = vpow2.f32 %v926_v34 }
 0x251   : > { %v924_v37 = vmul.f32 1.442695, %v913_v36 }
 0x252   : > { %v906_v38 = vpop.xlane.xlu0 %905  ;;  %v903_v39 = vpop.xlane.xlu1 %902 }
 0x253   : > { %1693 = vpow2.f32 %v924_v37  ;;  %v916_v40 = vsub.f32 %v878_v16, %v906_v38  ;;  %v915_v41 = vsub.f32 %v834_v11, %v903_v39 }
 0x254   : > { %v1686_v42 = vpop.eup %1685 }
 0x255   : > { %v930_v43 = vmul.f32 1.442695, %v916_v40  ;;  %v928_v44 = vmul.f32 1.442695, %v915_v41  ;;  %v934_v45 = vsel %vm885_vm2, %v1686_v42, 0.0 }
 0x256   : > { %935 = vadd.xlane.f32.xlu0 %v934_v45  ;;  %v909_v46 = vpop.xlane.xlu1 %908 }
 0x257   : > { %1695 = vpow2.f32 %v930_v43  ;;  %v917_v47 = vsub.f32 %v881_v20, %v909_v46 }
 0x258   : > { %v1688_v48 = vpop.eup %1687  ;;  %1697 = vpow2.f32 %v928_v44 }
 0x259   : > { %v932_v49 = vmul.f32 1.442695, %v917_v47  ;;  %v937_v50 = vsel %vm885_vm2, %v1688_v48, 0.0 }
 0x25a   : > { %938 = vadd.xlane.f32.xlu1 %v937_v50 }
 0x25b   : > { %1699 = vpow2.f32 %v932_v49 }
 0x25c   : > { %v1690_v51 = vpop.eup %1689 }
 0x25d   : > { %v940_v52 = vsel %vm885_vm2, %v1690_v51, 0.0  ;;  %v1692_v53 = vpop.eup %1691 }
 0x25e   : > { %941 = vadd.xlane.f32.xlu0 %v940_v52  ;;  %v946_v55 = vsel %vm885_vm2, %v1692_v53, 0.0 }
 0x260   : > { %v1694_v54 = vpop.eup %1693 }
 0x261   : > { %v943_v56 = vsel %vm885_vm2, %v1694_v54, 0.0 }
 0x262   : > { %947 = vadd.xlane.f32.xlu0 %v946_v55  ;;  %944 = vadd.xlane.f32.xlu1 %v943_v56 }
 0x264   : > { %v1696_v61 = vpop.eup %1695 }
 0x265   : > { %v1698_v62 = vpop.eup %1697  ;;  %v952_v63 = vsel %vm885_vm2, %v1696_v61, 0.0 }
 0x266   : > { %953 = vadd.xlane.f32.xlu0 %v952_v63  ;;  %v949_v0 = vsel %vm885_vm2, %v1698_v62, 0.0 }
 0x267   : > { %950 = vadd.xlane.f32.xlu1 %v949_v0 }
 0x268   : > { %v1700_v1 = vpop.eup %1699 }
 0x269   : > { %v955_v3 = vsel %vm885_vm2, %v1700_v1, 0.0 }
 0x26b   : > { %956 = vadd.xlane.f32.xlu1 %v955_v3 }
 0x2df   : > { %v936_v4 = vpop.xlane.xlu0 %935 }
 0x2e0   : > { %1701 = vrcp.f32 %v936_v4 }
 0x2e3   : > { %v939_v5 = vpop.xlane.xlu1 %938 }
 0x2e4   : > { %1703 = vrcp.f32 %v939_v5 }
 0x2e7   : > { %v942_v6 = vpop.xlane.xlu0 %941 }
 0x2e8   : > { %1705 = vrcp.f32 %v942_v6 }
 0x2eb   : > { %v948_v7 = vpop.xlane.xlu0 %947  ;;  %v945_v8 = vpop.xlane.xlu1 %944 }
 0x2ec   : > { %1707 = vrcp.f32 %v948_v7 }
 0x2ed   : > { %v1702_v9 = vpop.eup %1701  ;;  %1709 = vrcp.f32 %v945_v8 }
 0x2ee   : > { %v959_v10 = vmul.f32 %v1702_v9, %v1686_v42 }
 0x2ef   : > { %v954_v11 = vpop.xlane.xlu0 %953 }
 0x2f0   : > { %1711 = vrcp.f32 %v954_v11  ;;  %v951_v12 = vpop.xlane.xlu1 %950  ;;  %1261 = vst.msk [vmem:[%s2005_s26] sm:$0xff] %vm885_vm2, %v959_v10 }
 0x2f1   : > { %v1704_v13 = vpop.eup %1703  ;;  %1713 = vrcp.f32 %v951_v12 }
 0x2f2   : > { %v961_v15 = vmul.f32 %v1704_v13, %v1688_v48 }
 0x2f4   : > { %v957_v16 = vpop.xlane.xlu1 %956  ;;  %v974_v17 = vpack.c.bf16 %v961_v15, %v959_v10  ;;  %1262 = vst.msk [vmem:[%s2005_s26 + $0x8] sm:$0xff] %vm885_vm2, %v961_v15 }
 0x2f5   : > { %v1706_v18 = vpop.eup %1705  ;;  %1715 = vrcp.f32 %v957_v16 }
 0x2f6   : > { %1584 = vmatmul.mubr.msk.bf16.vlgmr.msra.gmra.mxu0 %vm885_vm2, %v974_v17  ;;  %v963_v20 = vmul.f32 %v1706_v18, %v1690_v51 }
 0x2f7   : > { %1594 = vmatpush3.bf16.msra.mxu0 %v695_v19  ;;  %1595 = vmatprep.mubr.msk.bf16.mxu0 %vm1810_vm1, %v1809_v14 }
 0x2f8   : > { %1263 = vst.msk [vmem:[%s2005_s26 + $0x10] sm:$0xff] %vm885_vm2, %v963_v20  ;;  %1605 = vmatprep.subr.bf16.mxu0 %v1683_v57 }
 0x2f9   : > { %v1708_v21 = vpop.eup %1707 }
 0x2fa   : > { %v1710_v22 = vpop.eup %1709  ;;  %v967_v23 = vmul.f32 %v1708_v21, %v1692_v53 }
 0x2fb   : > { %v965_v24 = vmul.f32 %v1710_v22, %v1694_v54 }
 0x2fc   : > { %1265 = vst.msk [vmem:[%s2005_s26 + $0x20] sm:$0xff] %vm885_vm2, %v967_v23 }
 0x2fd   : > { %v1712_v58 = vpop.eup %1711  ;;  %v975_v2 = vpack.c.bf16 %v965_v24, %v963_v20  ;;  %1264 = vst.msk [vmem:[%s2005_s26 + $0x18] sm:$0xff] %vm885_vm2, %v965_v24 }
 0x2fe   : > { %v1714_v25 = vpop.eup %1713  ;;  %v971_v26 = vmul.f32 %v1712_v58, %v1696_v61 }
 0x2ff   : > { %1590 = vmatmul.mubr.msk.bf16.vlgmr.msra.gmra.mxu1 %vm885_vm2, %v975_v2  ;;  %v969_v27 = vmul.f32 %v1714_v25, %v1698_v62 }
 0x300   : > { %1267 = vst.msk [vmem:[%s2005_s26 + $0x30] sm:$0xff] %vm885_vm2, %v971_v26  ;;  %1600 = vmatpush3.bf16.msra.mxu1 %v696_v60  ;;  %1601 = vmatprep.mubr.msk.bf16.mxu1 %vm1810_vm1, %v1809_v14  ;;  %v1684_v14 = vld [vmem:[%s2151_s5] sm:$0xff]  }
 0x301   : > { %v976_v28 = vpack.c.bf16 %v969_v27, %v967_v23  ;;  %1266 = vst.msk [vmem:[%s2005_s26 + $0x28] sm:$0xff] %vm885_vm2, %v969_v27 }
 0x302   : > { %v1716_v29 = vpop.eup %1715 }
 0x303   : > { %v973_v30 = vmul.f32 %v1716_v29, %v1700_v1  ;;  %1596 = vmatmul.mubr.msk.bf16.vlgmr.msra.gmra.mxu0 %vm885_vm2, %v976_v28 }
 0x304   : > { %1606 = vmatpush3.bf16.msra.mxu0 %v1683_v57 }
 0x305   : > { %1268 = vst.msk [vmem:[%s2005_s26 + $0x38] sm:$0xff] %vm885_vm2, %v973_v30  ;;  %v977_v31 = vpack.c.bf16 %v973_v30, %v971_v26  ;;  %1607 = vmatprep.subr.bf16.mxu0 %v1684_v14 }
 0x307   : > { %1602 = vmatmul.mubr.msk.bf16.vlgmr.msra.gmra.mxu1 %vm885_vm2, %v977_v31 }
 0x308   : > { %1608 = vmatpush3.bf16.msra.mxu0 %v1684_v14 }
 0x3b6   : > { %v1015_v59 = vpop.f32.mrf.mxu0 }
 0x3b8   : > { %v1585_v60 = vpop.f32.mrf.mxu0 }
 0x3ba   : > { %v1018_v32 = vpop.f32.mrf.mxu0 }
 0x3bb   : > { %v1154_v33 = vpack.c.bf16 %v1018_v32, %v1015_v59 }
 0x3bc   : > { %v1586_v34 = vpop.f32.mrf.mxu0 }
 0x3bd   : > { %1609 = vmatprep.mubr.msk.bf16.mxu0 %vm413_vm0, %v1154_v33 }
 0x3bf   : > { %v1059_v35 = vpop.f32.mrf.mxu1 }
 0x3c1   : > { %v1591_v36 = vpop.f32.mrf.mxu1 }
 0x3c3   : > { %v1062_v37 = vpop.f32.mrf.mxu1  ;;  %v1103_v38 = vpop.f32.mrf.mxu0 }
 0x3c4   : > { %v1155_v39 = vpack.c.bf16 %v1062_v37, %v1059_v35 }
 0x3c5   : > { %v1592_v40 = vpop.f32.mrf.mxu1  ;;  %v1597_v41 = vpop.f32.mrf.mxu0 }
 0x3c6   : > { %1610 = vmatmul.mubr.msk.bf16.vlgmr.msra.gmra.mxu0 %vm413_vm0, %v1155_v39 }
 0x3c7   : > { %v1106_v42 = vpop.f32.mrf.mxu0  ;;  %v1147_v43 = vpop.f32.mrf.mxu1 }
 0x3c8   : > { %v1156_v44 = vpack.c.bf16 %v1106_v42, %v1103_v38 }
 0x3c9   : > { %v1598_v45 = vpop.f32.mrf.mxu0  ;;  %v1603_v46 = vpop.f32.mrf.mxu1 }
 0x3ca   : > { %1613 = vmatprep.mubr.msk.bf16.mxu0 %vm413_vm0, %v1156_v44 }
 0x3cb   : > { %v1150_v47 = vpop.f32.mrf.mxu1 }
 0x3cc   : > { %v1157_v48 = vpack.c.bf16 %v1150_v47, %v1147_v43 }
 0x3cd   : > { %v1604_v49 = vpop.f32.mrf.mxu1 }
 0x3ce   : > { %1614 = vmatmul.mubr.msk.bf16.gmra.mxu0 %vm413_vm0, %v1157_v48 }
 0x3cf   : > { %1730 = shalt.err (!%p1727_p3)
}
 0x3d0   : > { %s1731_s26 = scalar_lea.hbm %s2052_s21, 1024  ;;  %s1735_s12 = scalar_lea.hbm %s2154_s8, 2048 }
 0x3d1   : > { %p1732_p4 = scmp.ne.s32.totalorder %s2052_s21, %s1731_s26  ;;  %p1736_p9 = scmp.lt.s32.totalorder %s2052_s21, %s2154_s8 }
 0x3d2   : > { %p1737_p10 = scmp.lt.s32.totalorder %s1735_s12, %s1731_s26 }
 0x3d3   : > { %p1733_p7 = pnand %p1732_p4, %p1898_p5 }
 0x3d4   : > { %p1738_p11 = por %p1737_p10, %p1736_p9 }
 0x3d5   : > { %p1734_p8 = pneg %p1733_p7 }
 0x3d7   : > { %p1739_p12 = pnand %p1738_p11, %p1734_p8 }
 0x3d9   : > { %1742 = shalt.err (!%p1739_p12)
}
 0x3da   : > { %s1812_s10 = smov 128   ;;  %s1813_s13 = smov 8   ;;  %v1458_v50 = vld [vmem:[%s2152_s6] ss:$0 sm:$0xff] }
 0x3db   : > { %1622 = dma.vmem_to_hbm [thread:$0]  (%p1898_p5), %s2055_s22, 1024, %s2052_s21, %s1275_s23, %s1812_s10, %s1812_s10, %s1813_s13  }
 0x3dc   : > { %s2159_s18 = sshll.u32 %s2000_s24, 6  ;;  %s2160_s22 = sshll.u32 %s1881_s9, 10 }
 0x3dd   : > { %s323_s26 = scalar_lea.vmem [#allocation2], %s2159_s18  ;;  %s2100_s19 = scalar_lea.hbm %s2153_s7, %s2160_s22 }
 0x3de   : > { %s1289_s21 = sshll.u32 %s323_s26, 4  ;;  %s1270_s12 = scalar_lea.sflag [#allocation3], %s2000_s24  ;;  %s2102_s21 = int_to_ptr.vmem [resolvable:$true] %s1289_s21 }
 0x3df   : > { %s1743_s17 = scalar_lea.vmem %s2102_s21, 1024  ;;  %s1814_s25 = smov [#allocation2]  }
 0x3e0   : > { %p1744_p13 = scmp.ne.s32.totalorder %s2102_s21, %s1743_s17  ;;  %s1747_s9 = sshll.u32 %s1814_s25, 4  ;;  %s1748_s9 = int_to_ptr.vmem [resolvable:$false] %s1747_s9 }
 0x3e1   : > { %s1749_s18 = scalar_lea.vmem %s1748_s9, 2048  ;;  %p1750_p2 = scmp.lt.s32.totalorder %s2102_s21, %s1748_s9 }
 0x3e2   : > { %p1745_p0 = pnand %p1744_p13, %p1898_p5  ;;  %p1751_p3 = scmp.lt.s32.totalorder %s1749_s18, %s1743_s17 }
 0x3e4   : > { %p1746_p1 = pneg %p1745_p0  ;;  %p1752_p4 = por %p1751_p3, %p1750_p2 }
 0x3e6   : > { %p1753_p7 = pnand %p1752_p4, %p1746_p1 }
 0x486   : > { %v1611_v51 = vpop.f32.mrf.mxu0 }
 0x487   : > { %v1231_v52 = vadd.f32 %v1611_v51, %v1458_v50 }
 0x488   : > { %v1222_v53 = vpop.f32.mrf.mxu0 }
 0x489   : > { %1255 = vst.msk [vmem:[%s323_s26 + $0x10] sm:$0xff] %vm413_vm0, %v1231_v52  ;;  %v1223_v54 = vadd.f32 %v1458_v50, %v1222_v53 }
 0x48a   : > { %v1612_v55 = vpop.f32.mrf.mxu0 }
 0x48b   : > { %1253 = vst.msk [vmem:[%s323_s26] sm:$0xff] %vm413_vm0, %v1223_v54  ;;  %v1234_v56 = vadd.f32 %v1612_v55, %v1458_v50 }
 0x48c   : > { %v1225_v61 = vpop.f32.mrf.mxu0 }
 0x48d   : > { %1256 = vst.msk [vmem:[%s323_s26 + $0x18] sm:$0xff] %vm413_vm0, %v1234_v56  ;;  %v1226_v62 = vadd.f32 %v1458_v50, %v1225_v61 }
 0x48e   : > { %v1615_v63 = vpop.f32.mrf.mxu0 }
 0x48f   : > { %1254 = vst.msk [vmem:[%s323_s26 + $0x8] sm:$0xff] %vm413_vm0, %v1226_v62  ;;  %v1247_v0 = vadd.f32 %v1615_v63, %v1458_v50 }
 0x490   : > { %v1238_v1 = vpop.f32.mrf.mxu0 }
 0x491   : > { %1259 = vst.msk [vmem:[%s323_s26 + $0x30] sm:$0xff] %vm413_vm0, %v1247_v0  ;;  %v1239_v3 = vadd.f32 %v1458_v50, %v1238_v1 }
 0x492   : > { %v1616_v4 = vpop.f32.mrf.mxu0 }
 0x493   : > { %1257 = vst.msk [vmem:[%s323_s26 + $0x20] sm:$0xff] %vm413_vm0, %v1239_v3  ;;  %v1250_v5 = vadd.f32 %v1616_v4, %v1458_v50 }
 0x494   : > { %v1241_v6 = vpop.f32.mrf.mxu0 }
 0x495   : > { %1260 = vst.msk [vmem:[%s323_s26 + $0x38] sm:$0xff] %vm413_vm0, %v1250_v5  ;;  %v1242_v7 = vadd.f32 %v1458_v50, %v1241_v6 }
 0x497   : > { %1258 = vst.msk [vmem:[%s323_s26 + $0x28] sm:$0xff] %vm413_vm0, %v1242_v7 }
 0x498   : > { %1756 = shalt.err (!%p1753_p7)
}
 0x499   : > { %s1757_s26 = scalar_lea.hbm %s2100_s19, 1024  ;;  %s1761_s23 = scalar_lea.hbm %s2153_s7, 2048 }
 0x49a   : > { %p1758_p8 = scmp.ne.s32.totalorder %s2100_s19, %s1757_s26  ;;  %p1762_p11 = scmp.lt.s32.totalorder %s2100_s19, %s2153_s7 }
 0x49b   : > { %p1763_p12 = scmp.lt.s32.totalorder %s1761_s23, %s1757_s26 }
 0x49c   : > { %p1759_p9 = pnand %p1758_p8, %p1898_p5 }
 0x49d   : > { %p1764_p13 = por %p1763_p12, %p1762_p11 }
 0x49e   : > { %p1760_p10 = pneg %p1759_p9 }
 0x4a0   : > { %p1765_p0 = pnand %p1764_p13, %p1760_p10 }
 0x4a2   : > { %1768 = shalt.err (!%p1765_p0)
}
 0x4a3   : > { %1621 = dma.vmem_to_hbm [thread:$0]  (%p1898_p5), %s2102_s21, 1024, %s2100_s19, %s1270_s12, %s1812_s10, %s1812_s10, %s1813_s13  }
 0x4a4 PF: > { %p1632_p1 = scmp.ge.s32.totalorder %s1807_s30, 2  ;;  %s1321_s17 = sand.u32 1, %s1795_s27  }
 0x4a5   : > { %s1322_s9 = scalar_lea.sflag [#allocation3], %s1321_s17 }
 0x4a6   : > { %p1626_p2 = pnand %p1632_p1, %p1902_p6 }
 0x4a8   : > { %p1627_p3 = pneg %p1626_p2 }
 0x4aa   : > { %1786 = dma.done.wait (%p1627_p3), %s1322_s9, 1024  }
 0x4ab   : > { %1788 = vsyncadd (%p1627_p3), %s1322_s9, 4294966272  ;;  %s1331_s18 = scalar_lea.sflag [#allocation5], %s1321_s17 }
 0x4ac   : > { %1790 = dma.done.wait (%p1627_p3), %s1331_s18, 1024  }
 0x4ad   : > { %1792 = vsyncadd (%p1627_p3), %s1331_s18, 4294966272  ;;  %p22_p5 = scmp.ge.s32.totalorder %s1885_s11, 4   ;;  %s2161_s27 = smov %s1799_s28 }
 0x4ae   : > { %s2162_s28 = smov %s1803_s29  ;;  %s2163_s29 = smov %s1896_s14 }
 0x4af   : > { %s2164_s30 = smov %s1885_s11  ;;  %24 = sbr.rel (!%p22_p5) target bundleno = 5 (0x5), region = 103 }
 0x4b4   :  { %1336 = vsyncpa [#allocation3], 1 }
 0x4b5   :  { %1338 = vsyncpa [#allocation3 + $0x1], 1 }
 0x4b6   :  { %1339 = vsyncpa [#allocation5], 1 }
 0x4b7   :  { %1341 = vsyncpa [#allocation5 + $0x1], 1 }

</bundles_post_ra>
